<compile_context>
chip_gen: v6e
topology: v6e:2x2x1
jax: 0.10.0
libtpu: 0.0.40
codegen_flags: <defaults>
</compile_context>

<pallas_src>
import functools
import math

import jax
import jax.numpy as jnp
from jax.experimental import pallas as pl
from jax.experimental.pallas import tpu as pltpu


def _round_up(x, m):
    return (x + m - 1) // m * m


# ---------------------------------------------------------------- kernel 1 --
def _projection_kernel(x_ref, w_ref, b_ref, o_ref, *, num_slabs, out_channels):
    """Fused q|k|v|skip projection: one wide MXU matmul, split head-major."""
    x = x_ref[...].astype(jnp.bfloat16)                       # [TM, Fin]
    proj = jnp.dot(x, w_ref[...], preferred_element_type=jnp.float32)
    proj = proj + b_ref[...]                                   # [TM, 4*H*C] f32
    for g in range(num_slabs):                                 # static unroll
        sl = slice(g * out_channels, (g + 1) * out_channels)
        o_ref[g] = proj[:, sl].astype(o_ref.dtype)             # [TM, C] bf16


# ---------------------------------------------------------------- kernel 2 --
def _attention_kernel(occ_ref, q_ref, k_ref, v_ref, skip_ref, adj_ref, o_ref,
                      m_scr, l_scr, acc_scr, *, heads, out_channels, hc_pad):
    i = pl.program_id(0)
    j = pl.program_id(1)
    nj = pl.num_programs(1)
    neg_big = jnp.float32(-1e30)

    @pl.when(j == 0)
    def _init():
        m_scr[...] = jnp.full_like(m_scr, neg_big)
        l_scr[...] = jnp.zeros_like(l_scr)
        acc_scr[...] = jnp.zeros_like(acc_scr)

    # Skip source tiles that carry no edges for this row tile (an all-masked
    # tile provably leaves the online-softmax state unchanged).
    @pl.when(occ_ref[i, j] > 0)
    def _compute():
        cnt = adj_ref[...].astype(jnp.float32)                 # [TM, TN] counts
        mask = cnt > 0.0                                       # computed once

        q = q_ref[...]                                         # [H, TM, C] bf16 (pre-scaled by 1/sqrt(C))
        k = k_ref[...]                                         # [H, TN, C] bf16
        v = v_ref[...]                                         # [H, TN, C] bf16

        s = jnp.einsum('hic,hjc->hij', q, k,
                       preferred_element_type=jnp.float32)     # [H, TM, TN] f32
        s = jnp.where(mask[None], s, neg_big)

        m_prev = m_scr[...]                                    # [H, TM, 1] f32
        m_new = jnp.maximum(m_prev, jnp.max(s, axis=-1, keepdims=True))
        corr = jnp.exp(m_prev - m_new)
        # exp(.) * cnt == segment-softmax numerator with duplicate-edge counts;
        # cnt == 0 also zeroes masked entries, so no second where is needed.
        p = jnp.exp(s - m_new) * cnt[None]                     # [H, TM, TN]

        l_scr[...] = corr * l_scr[...] + jnp.sum(p, axis=-1, keepdims=True)
        acc_scr[...] = corr * acc_scr[...] + jnp.einsum(
            'hij,hjc->hic', p.astype(v.dtype), v,
            preferred_element_type=jnp.float32)
        m_scr[...] = m_new

    @pl.when(j == nj - 1)
    def _finalize():
        denom = l_scr[...]                                     # [H, TM, 1]
        inv = jnp.where(denom > 0.0,
                        pl.reciprocal(denom, approx=True), 0.0)
        res = acc_scr[...] * inv + skip_ref[...].astype(jnp.float32)  # [H,TM,C]
        tm = res.shape[1]
        hc = heads * out_channels
        parts = [res[h] for h in range(heads)]                 # concat heads
        if hc_pad > hc:                                        # lane-dense pad
            parts.append(jnp.zeros((tm, hc_pad - hc), jnp.float32))
        out = jnp.concatenate(parts, axis=-1)                  # [TM, hc_pad]
        o_ref[...] = jnp.maximum(out, 0.0).astype(o_ref.dtype)


# ----------------------------------------------------------------- wrapper --
def transformer_gcn_layer(x, edge_index, params, *, heads, out_channels,
                          block_rows=128, block_cols=128):
    """x: [N, Fin] f32, edge_index: [2, E] int32 (row0=source, row1=target)."""
    assert block_rows % 8 == 0 and block_cols % 128 == 0
    n, fin = x.shape
    hc = heads * out_channels
    hc_pad = _round_up(hc, 128)
    n_pad = _round_up(n, math.lcm(block_rows, block_cols))
    num_i = n_pad // block_rows
    num_j = n_pad // block_cols
    num_slabs = 4 * heads

    # Fused projection weights, slab order [q | k | v | skip]; fold the
    # 1/sqrt(C) attention scale into the query projection.
    scale = 1.0 / math.sqrt(out_channels)
    w_fused = jnp.concatenate(
        [params["wq"] * scale, params["wk"], params["wv"], params["wskip"]],
        axis=1).astype(jnp.bfloat16)                           # [Fin, 4*H*C]
    b_fused = jnp.concatenate(
        [params["bq"] * scale, params["bk"], params["bv"], params["bskip"]],
        axis=1).astype(jnp.float32)                            # [1, 4*H*C]

    x_pad = jnp.zeros((n_pad, fin), jnp.float32).at[:n].set(x)

    proj = pl.pallas_call(
        functools.partial(_projection_kernel, num_slabs=num_slabs,
                          out_channels=out_channels),
        out_shape=jax.ShapeDtypeStruct((num_slabs, n_pad, out_channels),
                                       jnp.bfloat16),
        grid=(num_i,),
        in_specs=[
            pl.BlockSpec((block_rows, fin), lambda i: (i, 0)),
            pl.BlockSpec((fin, 4 * hc), lambda i: (0, 0)),
            pl.BlockSpec((1, 4 * hc), lambda i: (0, 0)),
        ],
        out_specs=pl.BlockSpec((num_slabs, block_rows, out_channels),
                               lambda i: (0, i, 0)),
        compiler_params=pltpu.CompilerParams(
            dimension_semantics=("parallel",)),
    )(x_pad, w_fused, b_fused)

    # Densify edge_index -> int8 edge-count matrix A[target, source].
    # TODO(synk): for very sparse large graphs, replace densification with a
    # CSR / data-dependent index_map schedule that also skips the DMA of empty
    # tiles (here only their compute is skipped via the occupancy table).
    src = edge_index[0].astype(jnp.int32)
    dst = edge_index[1].astype(jnp.int32)
    adj32 = jnp.zeros((n_pad, n_pad), jnp.int32).at[dst, src].add(1)
    adj = adj32.astype(jnp.int8)            # assumes edge multiplicity < 128
    occ = adj32.reshape(num_i, block_rows, num_j, block_cols).sum(
        axis=(1, 3)).astype(jnp.int32)      # edges per (row_tile, col_tile)

    grid_spec = pltpu.PrefetchScalarGridSpec(
        num_scalar_prefetch=1,
        grid=(num_i, num_j),
        in_specs=[
            pl.BlockSpec((heads, block_rows, out_channels),
                         lambda i, j, _occ: (0, i, 0)),        # q heads
            pl.BlockSpec((heads, block_cols, out_channels),
                         lambda i, j, _occ: (1, j, 0)),        # k heads
            pl.BlockSpec((heads, block_cols, out_channels),
                         lambda i, j, _occ: (2, j, 0)),        # v heads
            pl.BlockSpec((heads, block_rows, out_channels),
                         lambda i, j, _occ: (3, i, 0)),        # skip heads
            pl.BlockSpec((block_rows, block_cols),
                         lambda i, j, _occ: (i, j)),           # adjacency
        ],
        out_specs=pl.BlockSpec((block_rows, hc_pad),
                               lambda i, j, _occ: (i, 0)),
        scratch_shapes=[
            pltpu.VMEM((heads, block_rows, 1), jnp.float32),   # running max
            pltpu.VMEM((heads, block_rows, 1), jnp.float32),   # running denom
            pltpu.VMEM((heads, block_rows, out_channels), jnp.float32),  # acc
        ],
    )
    cost = pl.CostEstimate(
        flops=4 * heads * out_channels * n_pad * n_pad
        + 2 * n_pad * fin * 4 * hc,
        transcendentals=heads * n_pad * n_pad,
        bytes_accessed=adj.size + 2 * proj.size + 4 * n_pad * hc_pad,
    )
    out = pl.pallas_call(
        functools.partial(_attention_kernel, heads=heads,
                          out_channels=out_channels, hc_pad=hc_pad),
        out_shape=jax.ShapeDtypeStruct((n_pad, hc_pad), jnp.float32),
        grid_spec=grid_spec,
        compiler_params=pltpu.CompilerParams(
            dimension_semantics=("parallel", "arbitrary"),
            vmem_limit_bytes=32 * 1024 * 1024),
        cost_estimate=cost,
    )(occ, proj, proj, proj, proj, adj)

    return out[:n, :hc]


# --------------------------------------------------------------- reference --
def reference_forward(x, edge_index, params, *, heads, out_channels):
    """Pure-JAX f32 reference matching PyG TransformerConv + ReLU."""
    n = x.shape[0]
    hc = heads * out_channels
    q = (x @ params["wq"] + params["bq"]).reshape(n, heads, out_channels)
    k = (x @ params["wk"] + params["bk"]).reshape(n, heads, out_channels)
    v = (x @ params["wv"] + params["bv"]).reshape(n, heads, out_channels)
    skip = x @ params["wskip"] + params["bskip"]

    src, dst = edge_index[0], edge_index[1]
    s = jnp.einsum('ehc,ehc->eh', q[dst], k[src]) / math.sqrt(out_channels)
    m = jnp.full((n, heads), -jnp.inf, jnp.float32).at[dst].max(s)
    p = jnp.exp(s - m[dst])
    denom = jnp.zeros((n, heads), jnp.float32).at[dst].add(p)
    alpha = p / denom[dst]
    agg = jnp.zeros((n, heads, out_channels), jnp.float32).at[dst].add(
        alpha[:, :, None] * v[src])
    return jnp.maximum(agg.reshape(n, hc) + skip, 0.0)


def init_params(key, in_features, out_channels, heads):
    hc = heads * out_channels
    ks = jax.random.split(key, 8)
    bound = 1.0 / math.sqrt(in_features)

    def w(k):
        return jax.random.uniform(k, (in_features, hc), jnp.float32, -bound, bound)

    def b(k):
        return jax.random.uniform(k, (1, hc), jnp.float32, -bound, bound)

    return {
        "wq": w(ks[0]), "bq": b(ks[1]),
        "wk": w(ks[2]), "bk": b(ks[3]),
        "wv": w(ks[4]), "bv": b(ks[5]),
        "wskip": w(ks[6]), "bskip": b(ks[7]),
    }


if __name__ == "__main__":
    # Small synthetic graph.
    N, FIN, OUT, HEADS, E = 64, 16, 32, 2, 256

    key = jax.random.PRNGKey(0)
    kx, ke1, ke2, kp = jax.random.split(key, 4)
    x = jax.random.normal(kx, (N, FIN), jnp.float32)
    edge_index = jnp.stack(
        [jax.random.randint(ke1, (E,), 0, N),
         jax.random.randint(ke2, (E,), 0, N)]).astype(jnp.int32)
    params = init_params(kp, FIN, OUT, HEADS)

    # TODO(synk): edge_attr / edge_dim path (in_edges) not implemented; module
    # defaults in_edges=None, batch_norm=False, drop_out=0.0 (identity).
    y = transformer_gcn_layer(x, edge_index, params, heads=HEADS,
                              out_channels=OUT)
    jax.block_until_ready(y)
    assert y.shape == (N, HEADS * OUT) and y.dtype == jnp.float32

    y_ref = reference_forward(x, edge_index, params, heads=HEADS,
                              out_channels=OUT)
    max_err = float(jnp.max(jnp.abs(y - y_ref)))
    assert jnp.allclose(y, y_ref, rtol=5e-2, atol=5e-2), f"max abs err {max_err}"
    print("KERNEL_OK")
</pallas_src>

<mosaic_0001>
module attributes {stable_mosaic.version = 11 : i64} {
  func.func @_projection_kernel(%arg0: i32, %arg1: memref<128x16xf32, #tpu.memory_space<vmem>>, %arg2: memref<16x256xbf16, #tpu.memory_space<vmem>>, %arg3: memref<1x256xf32, #tpu.memory_space<vmem>>, %arg4: memref<8x128x32xbf16, #tpu.memory_space<vmem>>) attributes {dimension_semantics = [#tpu.dimension_semantics<parallel>], iteration_bounds = array<i64: 1>, scalar_prefetch = 0 : i64, scratch_operands = 0 : i64, tpu.core_type = #tpu.core_type<tc>, window_params = [{transform_indices = @transform_0, window_bounds = array<i64: 128, 16>}, {pipeline_mode = #tpu.pipeline_mode<synchronous>, transform_indices = @transform_1, window_bounds = array<i64: 16, 256>}, {pipeline_mode = #tpu.pipeline_mode<synchronous>, transform_indices = @transform_2, window_bounds = array<i64: 1, 256>}, {transform_indices = @transform_3, window_bounds = array<i64: 8, 128, 32>}]} {
    %c0 = arith.constant 0 : index
    %c0_0 = arith.constant 0 : index
    %0 = vector.load %arg1[%c0, %c0_0] : memref<128x16xf32, #tpu.memory_space<vmem>>, vector<128x16xf32>
    %1 = arith.truncf %0 : vector<128x16xf32> to vector<128x16xbf16>
    %c0_1 = arith.constant 0 : index
    %c0_2 = arith.constant 0 : index
    %2 = vector.load %arg2[%c0_1, %c0_2] : memref<16x256xbf16, #tpu.memory_space<vmem>>, vector<16x256xbf16>
    %cst = arith.constant dense<0.000000e+00> : vector<128x256xf32>
    %3 = tpu.matmul %1, %2, %cst {dimension_numbers = #tpu.dot_dimension_numbers<[1], [0], [0], [1], [0, 0, 1, 1], [], []>} : vector<128x16xbf16>, vector<16x256xbf16>, vector<128x256xf32> -> vector<128x256xf32>
    %c0_3 = arith.constant 0 : index
    %c0_4 = arith.constant 0 : index
    %4 = vector.load %arg3[%c0_3, %c0_4] : memref<1x256xf32, #tpu.memory_space<vmem>>, vector<1x256xf32>
    %5 = vector.broadcast %4 : vector<1x256xf32> to vector<128x256xf32>
    %6 = arith.addf %3, %5 : vector<128x256xf32>
    %7 = vector.extract_strided_slice %6 {offsets = [0, 0], sizes = [128, 32], strides = [1, 1]} : vector<128x256xf32> to vector<128x32xf32>
    %8 = arith.truncf %7 : vector<128x32xf32> to vector<128x32xbf16>
    %c0_5 = arith.constant 0 : index
    %c0_6 = arith.constant 0 : index
    %c0_7 = arith.constant 0 : index
    %9 = vector.load %arg4[%c0_5, %c0_6, %c0_7] : memref<8x128x32xbf16, #tpu.memory_space<vmem>>, vector<1x128x32xbf16>
    %10 = vector.shape_cast %9 : vector<1x128x32xbf16> to vector<128x32xbf16>
    %11 = vector.shape_cast %8 : vector<128x32xbf16> to vector<1x128x32xbf16>
    tpu.vector_store %arg4[%c0_5, %c0_6, %c0_7], %11 {strides = array<i32>} : memref<8x128x32xbf16, #tpu.memory_space<vmem>>, vector<1x128x32xbf16>,
    %12 = vector.extract_strided_slice %6 {offsets = [0, 32], sizes = [128, 32], strides = [1, 1]} : vector<128x256xf32> to vector<128x32xf32>
    %13 = arith.truncf %12 : vector<128x32xf32> to vector<128x32xbf16>
    %c1 = arith.constant 1 : index
    %c0_8 = arith.constant 0 : index
    %c0_9 = arith.constant 0 : index
    %14 = vector.load %arg4[%c1, %c0_8, %c0_9] : memref<8x128x32xbf16, #tpu.memory_space<vmem>>, vector<1x128x32xbf16>
    %15 = vector.shape_cast %14 : vector<1x128x32xbf16> to vector<128x32xbf16>
    %16 = vector.shape_cast %13 : vector<128x32xbf16> to vector<1x128x32xbf16>
    tpu.vector_store %arg4[%c1, %c0_8, %c0_9], %16 {strides = array<i32>} : memref<8x128x32xbf16, #tpu.memory_space<vmem>>, vector<1x128x32xbf16>,
    %17 = vector.extract_strided_slice %6 {offsets = [0, 64], sizes = [128, 32], strides = [1, 1]} : vector<128x256xf32> to vector<128x32xf32>
    %18 = arith.truncf %17 : vector<128x32xf32> to vector<128x32xbf16>
    %c2 = arith.constant 2 : index
    %c0_10 = arith.constant 0 : index
    %c0_11 = arith.constant 0 : index
    %19 = vector.load %arg4[%c2, %c0_10, %c0_11] : memref<8x128x32xbf16, #tpu.memory_space<vmem>>, vector<1x128x32xbf16>
    %20 = vector.shape_cast %19 : vector<1x128x32xbf16> to vector<128x32xbf16>
    %21 = vector.shape_cast %18 : vector<128x32xbf16> to vector<1x128x32xbf16>
    tpu.vector_store %arg4[%c2, %c0_10, %c0_11], %21 {strides = array<i32>} : memref<8x128x32xbf16, #tpu.memory_space<vmem>>, vector<1x128x32xbf16>,
    %22 = vector.extract_strided_slice %6 {offsets = [0, 96], sizes = [128, 32], strides = [1, 1]} : vector<128x256xf32> to vector<128x32xf32>
    %23 = arith.truncf %22 : vector<128x32xf32> to vector<128x32xbf16>
    %c3 = arith.constant 3 : index
    %c0_12 = arith.constant 0 : index
    %c0_13 = arith.constant 0 : index
    %24 = vector.load %arg4[%c3, %c0_12, %c0_13] : memref<8x128x32xbf16, #tpu.memory_space<vmem>>, vector<1x128x32xbf16>
    %25 = vector.shape_cast %24 : vector<1x128x32xbf16> to vector<128x32xbf16>
    %26 = vector.shape_cast %23 : vector<128x32xbf16> to vector<1x128x32xbf16>
    tpu.vector_store %arg4[%c3, %c0_12, %c0_13], %26 {strides = array<i32>} : memref<8x128x32xbf16, #tpu.memory_space<vmem>>, vector<1x128x32xbf16>,
    %27 = vector.extract_strided_slice %6 {offsets = [0, 128], sizes = [128, 32], strides = [1, 1]} : vector<128x256xf32> to vector<128x32xf32>
    %28 = arith.truncf %27 : vector<128x32xf32> to vector<128x32xbf16>
    %c4 = arith.constant 4 : index
    %c0_14 = arith.constant 0 : index
    %c0_15 = arith.constant 0 : index
    %29 = vector.load %arg4[%c4, %c0_14, %c0_15] : memref<8x128x32xbf16, #tpu.memory_space<vmem>>, vector<1x128x32xbf16>
    %30 = vector.shape_cast %29 : vector<1x128x32xbf16> to vector<128x32xbf16>
    %31 = vector.shape_cast %28 : vector<128x32xbf16> to vector<1x128x32xbf16>
    tpu.vector_store %arg4[%c4, %c0_14, %c0_15], %31 {strides = array<i32>} : memref<8x128x32xbf16, #tpu.memory_space<vmem>>, vector<1x128x32xbf16>,
    %32 = vector.extract_strided_slice %6 {offsets = [0, 160], sizes = [128, 32], strides = [1, 1]} : vector<128x256xf32> to vector<128x32xf32>
    %33 = arith.truncf %32 : vector<128x32xf32> to vector<128x32xbf16>
    %c5 = arith.constant 5 : index
    %c0_16 = arith.constant 0 : index
    %c0_17 = arith.constant 0 : index
    %34 = vector.load %arg4[%c5, %c0_16, %c0_17] : memref<8x128x32xbf16, #tpu.memory_space<vmem>>, vector<1x128x32xbf16>
    %35 = vector.shape_cast %34 : vector<1x128x32xbf16> to vector<128x32xbf16>
    %36 = vector.shape_cast %33 : vector<128x32xbf16> to vector<1x128x32xbf16>
    tpu.vector_store %arg4[%c5, %c0_16, %c0_17], %36 {strides = array<i32>} : memref<8x128x32xbf16, #tpu.memory_space<vmem>>, vector<1x128x32xbf16>,
    %37 = vector.extract_strided_slice %6 {offsets = [0, 192], sizes = [128, 32], strides = [1, 1]} : vector<128x256xf32> to vector<128x32xf32>
    %38 = arith.truncf %37 : vector<128x32xf32> to vector<128x32xbf16>
    %c6 = arith.constant 6 : index
    %c0_18 = arith.constant 0 : index
    %c0_19 = arith.constant 0 : index
    %39 = vector.load %arg4[%c6, %c0_18, %c0_19] : memref<8x128x32xbf16, #tpu.memory_space<vmem>>, vector<1x128x32xbf16>
    %40 = vector.shape_cast %39 : vector<1x128x32xbf16> to vector<128x32xbf16>
    %41 = vector.shape_cast %38 : vector<128x32xbf16> to vector<1x128x32xbf16>
    tpu.vector_store %arg4[%c6, %c0_18, %c0_19], %41 {strides = array<i32>} : memref<8x128x32xbf16, #tpu.memory_space<vmem>>, vector<1x128x32xbf16>,
    %42 = vector.extract_strided_slice %6 {offsets = [0, 224], sizes = [128, 32], strides = [1, 1]} : vector<128x256xf32> to vector<128x32xf32>
    %43 = arith.truncf %42 : vector<128x32xf32> to vector<128x32xbf16>
    %c7 = arith.constant 7 : index
    %c0_20 = arith.constant 0 : index
    %c0_21 = arith.constant 0 : index
    %44 = vector.load %arg4[%c7, %c0_20, %c0_21] : memref<8x128x32xbf16, #tpu.memory_space<vmem>>, vector<1x128x32xbf16>
    %45 = vector.shape_cast %44 : vector<1x128x32xbf16> to vector<128x32xbf16>
    %46 = vector.shape_cast %43 : vector<128x32xbf16> to vector<1x128x32xbf16>
    tpu.vector_store %arg4[%c7, %c0_20, %c0_21], %46 {strides = array<i32>} : memref<8x128x32xbf16, #tpu.memory_space<vmem>>, vector<1x128x32xbf16>,
    return
  }
  func.func @transform_0(%arg0: i32) -> (i32, i32) {
    %c0_i32 = arith.constant 0 : i32
    %c0_i32_0 = arith.constant 0 : i32
    return %arg0, %c0_i32 : i32, i32
  }
  func.func @transform_1(%arg0: i32) -> (i32, i32) {
    %c0_i32 = arith.constant 0 : i32
    %c0_i32_0 = arith.constant 0 : i32
    %c0_i32_1 = arith.constant 0 : i32
    return %c0_i32, %c0_i32_0 : i32, i32
  }
  func.func @transform_2(%arg0: i32) -> (i32, i32) {
    %c0_i32 = arith.constant 0 : i32
    %c0_i32_0 = arith.constant 0 : i32
    %c0_i32_1 = arith.constant 0 : i32
    return %c0_i32, %c0_i32_0 : i32, i32
  }
  func.func @transform_3(%arg0: i32) -> (i32, i32, i32) {
    %c0_i32 = arith.constant 0 : i32
    %c0_i32_0 = arith.constant 0 : i32
    %c0_i32_1 = arith.constant 0 : i32
    return %c0_i32, %arg0, %c0_i32_0 : i32, i32, i32
  }
}

</mosaic_0001>

<bundles_post_ra>
// kernel: tpu_custom_call.1
= control target key start
LH: loop header
LB: loop body
LE: loop exit
PB: predicated region body
PF: predicated region fallthrough
CT: control target
= control target key end

     0   :  { %v952_v1 = vmov 0   ;;  %vm63_vm0 = vcmask 130048   ;;  %v43_v27 = vlaneseq  ;;  %vm265_vm1 = vcmask 257024   ;;  %s954_s9 = smov 64   ;;  %s955_s24 = smov 32   ;;  %s1877_s1 = inlined_call_operand.vmem [shape: bf16[16,256], index: 1, kind: input, shape index: {}]   ;;  %s1878_s0 = inlined_call_operand.vmem [shape: f32[128,16], index: 0, kind: input, shape index: {}]   ;;  %s1879_s2 = inlined_call_operand.vmem [shape: f32[1,256], index: 2, kind: input, shape index: {}]   ;;  %s1880_s3 = inlined_call_operand.vmem [shape: bf16[8,128,32], index: 3, kind: output, shape index: {}]  }
   0x1   :  { %v949_v0 = vld [vmem:[%s1877_s1 + $0x4] ss:$8 sps:$4 sm:$0xff]   ;;  %120 = vmatprep.mubr.bf16.mxu0 %v952_v1  ;;  %160 = vmatprep.mubr.bf16.mxu1 %v952_v1  ;;  %v951_v2 = vld [vmem:[%s1877_s1] ss:$8 sps:$4 sm:$0xff]   ;;  %v17_v9 = vld [vmem:[%s1878_s0 + $0x10] sm:$0xff]  ;;  %s953_s1 = smov 96  }
   0x2   :  { %v15_v3 = vld [vmem:[%s1878_s0] sm:$0xff]  ;;  %v16_v4 = vld [vmem:[%s1878_s0 + $0x8] sm:$0xff]  ;;  %102 = vmatprep.subr.bf16.mxu0 %v949_v0  ;;  %943 = vmatprep.subr.bf16.mxu1 %v949_v0  ;;  %v18_v10 = vld [vmem:[%s1878_s0 + $0x18] sm:$0xff]  ;;  %v44_v28 = vshrl.u32 %v43_v27, 7 }
   0x3   :  { %v31_v5 = vpack.c.bf16 %v16_v4, %v15_v3  ;;  %v23_v6 = vld [vmem:[%s1878_s0 + $0x40] sm:$0xff]  ;;  %v24_v7 = vld [vmem:[%s1878_s0 + $0x48] sm:$0xff]  ;;  %103 = vmatpush1.bf16.msra.mxu0 %v951_v2  ;;  %944 = vmatpush1.bf16.msra.mxu1 %v951_v2  ;;  %v25_v11 = vld [vmem:[%s1878_s0 + $0x50] sm:$0xff]  ;;  %v32_v13 = vpack.c.bf16 %v18_v10, %v17_v9 }
   0x4   :  { %v35_v8 = vpack.c.bf16 %v24_v7, %v23_v6  ;;  %v26_v12 = vld [vmem:[%s1878_s0 + $0x58] sm:$0xff]  ;;  %v19_v15 = vld [vmem:[%s1878_s0 + $0x20] sm:$0xff]  ;;  %v20_v16 = vld [vmem:[%s1878_s0 + $0x28] sm:$0xff]  ;;  %v45_v29 = vsub.s32 0, %v44_v28  ;;  %v49_v31 = vsub.s32 1, %v44_v28 }
   0x5   :  { %v36_v14 = vpack.c.bf16 %v26_v12, %v25_v11  ;;  %v27_v17 = vld [vmem:[%s1878_s0 + $0x60] sm:$0xff]  ;;  %v28_v18 = vld [vmem:[%s1878_s0 + $0x68] sm:$0xff]  ;;  %v33_v19 = vpack.c.bf16 %v20_v16, %v19_v15  ;;  %v21_v21 = vld [vmem:[%s1878_s0 + $0x30] sm:$0xff] }
   0x6   :  { %759 = vmatmul.mubr.msk.bf16.vlgmr.msra.gmra.mxu0 %vm63_vm0, %v31_v5  ;;  %763 = vmatmul.mubr.msk.bf16.vlgmr.msra.gmra.mxu1 %vm63_vm0, %v35_v8  ;;  %v37_v20 = vpack.c.bf16 %v28_v18, %v27_v17  ;;  %v22_v22 = vld [vmem:[%s1878_s0 + $0x38] sm:$0xff]  ;;  %v29_v23 = vld [vmem:[%s1878_s0 + $0x70] sm:$0xff]  ;;  %v41_v30 = vld [vmem:[%s1879_s2] sm:$0x3] }
   0x7   :  { %130 = vmatprep.mubr.bf16.mxu0 %v952_v1  ;;  %170 = vmatprep.mubr.bf16.mxu1 %v952_v1  ;;  %v30_v24 = vld [vmem:[%s1878_s0 + $0x78] sm:$0xff]  ;;  %v34_v25 = vpack.c.bf16 %v22_v22, %v21_v21  ;;  %v1041_v32 = vrot.slane %v41_v30, %v45_v29  ;;  %v1043_v33 = vrot.slane %v41_v30, %v49_v31 }
   0x8   :  { %v38_v26 = vpack.c.bf16 %v30_v24, %v29_v23 }
   0xe   :  { %760 = vmatmul.mubr.msk.bf16.gmra.mxu0 %vm63_vm0, %v32_v13  ;;  %764 = vmatmul.mubr.msk.bf16.gmra.mxu1 %vm63_vm0, %v36_v14 }
   0xf   :  { %140 = vmatprep.mubr.bf16.mxu0 %v952_v1  ;;  %180 = vmatprep.mubr.bf16.mxu1 %v952_v1 }
  0x16   :  { %761 = vmatmul.mubr.msk.bf16.gmra.mxu0 %vm63_vm0, %v33_v19  ;;  %765 = vmatmul.mubr.msk.bf16.gmra.mxu1 %vm63_vm0, %v37_v20 }
  0x17   :  { %150 = vmatprep.mubr.bf16.mxu0 %v952_v1  ;;  %190 = vmatprep.mubr.bf16.mxu1 %v952_v1 }
  0x1e   :  { %762 = vmatmul.mubr.msk.bf16.gmra.mxu0 %vm63_vm0, %v34_v25  ;;  %766 = vmatmul.mubr.msk.bf16.gmra.mxu1 %vm63_vm0, %v38_v26 }
  0xc6   :  { %v122_v34 = vpop.f32.mrf.mxu0  ;;  %v162_v35 = vpop.f32.mrf.mxu1 }
  0xc7   :  { %v123_v36 = vadd.f32 %v122_v34, %v1041_v32  ;;  %v163_v37 = vadd.f32 %v162_v35, %v1041_v32 }
  0xc8   :  { %v124_v38 = vpop.f32.mrf.mxu0  ;;  %v164_v39 = vpop.f32.mrf.mxu1 }
  0xc9   :  { %v1047_v40 = vpack.c.bf16 %v123_v36, %v123_v36  ;;  %v1049_v41 = vpack.c.bf16 %v163_v37, %v163_v37  ;;  %v125_v42 = vadd.f32 %v124_v38, %v1043_v33  ;;  %v165_v43 = vadd.f32 %v164_v39, %v1043_v33 }
  0xca   :  { %v126_v44 = vpop.f32.mrf.mxu0  ;;  %v166_v45 = vpop.f32.mrf.mxu1 }
  0xcb   :  { %266 = vst.msk [vmem:[%s1880_s3] sm:$0xf] %vm265_vm1, %v1047_v40  ;;  %274 = vst.msk [vmem:[%s1880_s3 + $0x20] sm:$0xf] %vm265_vm1, %v1049_v41  ;;  %v1063_v46 = vpack.c.bf16 %v125_v42, %v125_v42  ;;  %v1065_v47 = vpack.c.bf16 %v165_v43, %v165_v43  ;;  %v127_v48 = vadd.f32 %v126_v44, %v1041_v32  ;;  %282 = vrot.lane.b32.xlu0 %v1047_v40, %s953_s1 }
  0xcc   :  { %v167_v49 = vadd.f32 %v166_v45, %v1041_v32  ;;  %v128_v50 = vpop.f32.mrf.mxu0  ;;  %v168_v51 = vpop.f32.mrf.mxu1 }
  0xcd   :  { %847 = vst.msk [vmem:[%s1880_s3 + $0x100] sm:$0xf] %vm265_vm1, %v1063_v46  ;;  %855 = vst.msk [vmem:[%s1880_s3 + $0x120] sm:$0xf] %vm265_vm1, %v1065_v47  ;;  %v1081_v52 = vpack.c.bf16 %v127_v48, %v127_v48  ;;  %v129_v54 = vadd.f32 %v128_v50, %v1043_v33  ;;  %v169_v55 = vadd.f32 %v168_v51, %v1043_v33 }
  0xce   :  { %v1083_v53 = vpack.c.bf16 %v167_v49, %v167_v49  ;;  %v132_v56 = vpop.f32.mrf.mxu0  ;;  %v172_v57 = vpop.f32.mrf.mxu1 }
  0xcf   :  { %267 = vst.msk [vmem:[%s1880_s3 + $0x4] sm:$0xf] %vm265_vm1, %v1081_v52  ;;  %v1097_v58 = vpack.c.bf16 %v129_v54, %v129_v54  ;;  %v1099_v59 = vpack.c.bf16 %v169_v55, %v169_v55  ;;  %298 = vrot.lane.b32.xlu0 %v1049_v41, %s953_s1  ;;  %v133_v60 = vadd.f32 %v132_v56, %v1041_v32 }
  0xd0   :  { %275 = vst.msk [vmem:[%s1880_s3 + $0x24] sm:$0xf] %vm265_vm1, %v1083_v53  ;;  %300 = vrot.lane.b32.xlu1 %v1083_v53, %s953_s1  ;;  %v134_v61 = vpop.f32.mrf.mxu0  ;;  %v173_v62 = vadd.f32 %v172_v57, %v1041_v32  ;;  %v174_v63 = vpop.f32.mrf.mxu1 }
  0xd1   :  { %848 = vst.msk [vmem:[%s1880_s3 + $0x104] sm:$0xf] %vm265_vm1, %v1097_v58  ;;  %856 = vst.msk [vmem:[%s1880_s3 + $0x124] sm:$0xf] %vm265_vm1, %v1099_v59  ;;  %v1117_v0 = vpack.c.bf16 %v133_v60, %v133_v60  ;;  %v135_v1 = vadd.f32 %v134_v61, %v1043_v33  ;;  %v175_v2 = vadd.f32 %v174_v63, %v1043_v33 }
  0xd2   :  { %v136_v3 = vpop.f32.mrf.mxu0  ;;  %v1121_v4 = vpack.c.bf16 %v173_v62, %v173_v62  ;;  %v176_v5 = vpop.f32.mrf.mxu1 }
  0xd3   :  { %347 = vrot.lane.b32.xlu0 %v1047_v40, %s954_s9  ;;  %268 = vst.msk [vmem:[%s1880_s3 + $0x8] sm:$0xf] %vm265_vm1, %v1117_v0  ;;  %v1132_v6 = vpack.c.bf16 %v135_v1, %v135_v1  ;;  %v137_v7 = vadd.f32 %v136_v3, %v1041_v32  ;;  %v1135_v8 = vpack.c.bf16 %v175_v2, %v175_v2 }
  0xd4   :  { %349 = vrot.lane.b32.xlu1 %v1081_v52, %s954_s9  ;;  %276 = vst.msk [vmem:[%s1880_s3 + $0x28] sm:$0xf] %vm265_vm1, %v1121_v4  ;;  %v138_v9 = vpop.f32.mrf.mxu0  ;;  %v177_v10 = vadd.f32 %v176_v5, %v1041_v32  ;;  %v178_v11 = vpop.f32.mrf.mxu1 }
  0xd5   :  { %849 = vst.msk [vmem:[%s1880_s3 + $0x108] sm:$0xf] %vm265_vm1, %v1132_v6  ;;  %v1148_v12 = vpack.c.bf16 %v137_v7, %v137_v7  ;;  %v139_v13 = vadd.f32 %v138_v9, %v1043_v33  ;;  %857 = vst.msk [vmem:[%s1880_s3 + $0x128] sm:$0xf] %vm265_vm1, %v1135_v8  ;;  %v179_v14 = vadd.f32 %v178_v11, %v1043_v33 }
  0xd6   :  { %v1157_v15 = vpack.c.bf16 %v177_v10, %v177_v10  ;;  %v142_v16 = vpop.f32.mrf.mxu0  ;;  %v182_v17 = vpop.f32.mrf.mxu1 }
  0xd7   :  { %363 = vrot.lane.b32.xlu0 %v1049_v41, %s954_s9  ;;  %269 = vst.msk [vmem:[%s1880_s3 + $0xc] sm:$0xf] %vm265_vm1, %v1148_v12  ;;  %v1168_v18 = vpack.c.bf16 %v139_v13, %v139_v13  ;;  %v1170_v19 = vpack.c.bf16 %v179_v14, %v179_v14  ;;  %v143_v20 = vadd.f32 %v142_v16, %v1041_v32 }
  0xd8   :  { %365 = vrot.lane.b32.xlu1 %v1083_v53, %s954_s9  ;;  %277 = vst.msk [vmem:[%s1880_s3 + $0x2c] sm:$0xf] %vm265_vm1, %v1157_v15  ;;  %v144_v21 = vpop.f32.mrf.mxu0  ;;  %v183_v22 = vadd.f32 %v182_v17, %v1041_v32  ;;  %v184_v23 = vpop.f32.mrf.mxu1 }
  0xd9   :  { %850 = vst.msk [vmem:[%s1880_s3 + $0x10c] sm:$0xf] %vm265_vm1, %v1168_v18  ;;  %858 = vst.msk [vmem:[%s1880_s3 + $0x12c] sm:$0xf] %vm265_vm1, %v1170_v19  ;;  %v1189_v24 = vpack.c.bf16 %v143_v20, %v143_v20  ;;  %v145_v25 = vadd.f32 %v144_v21, %v1043_v33  ;;  %v185_v26 = vadd.f32 %v184_v23, %v1043_v33 }
  0xda   :  { %v146_v27 = vpop.f32.mrf.mxu0  ;;  %v1193_v28 = vpack.c.bf16 %v183_v22, %v183_v22  ;;  %v186_v29 = vpop.f32.mrf.mxu1 }
  0xdb   :  { %412 = vrot.lane.b32.xlu0 %v1047_v40, %s955_s24  ;;  %270 = vst.msk [vmem:[%s1880_s3 + $0x10] sm:$0xf] %vm265_vm1, %v1189_v24  ;;  %v1204_v30 = vpack.c.bf16 %v145_v25, %v145_v25  ;;  %v147_v31 = vadd.f32 %v146_v27, %v1041_v32  ;;  %v1207_v34 = vpack.c.bf16 %v185_v26, %v185_v26 }
  0xdc   :  { %414 = vrot.lane.b32.xlu1 %v1081_v52, %s955_s24  ;;  %278 = vst.msk [vmem:[%s1880_s3 + $0x30] sm:$0xf] %vm265_vm1, %v1193_v28  ;;  %v148_v35 = vpop.f32.mrf.mxu0  ;;  %v187_v36 = vadd.f32 %v186_v29, %v1041_v32  ;;  %v188_v37 = vpop.f32.mrf.mxu1 }
  0xdd   :  { %851 = vst.msk [vmem:[%s1880_s3 + $0x110] sm:$0xf] %vm265_vm1, %v1204_v30  ;;  %v1220_v38 = vpack.c.bf16 %v147_v31, %v147_v31  ;;  %v149_v39 = vadd.f32 %v148_v35, %v1043_v33  ;;  %859 = vst.msk [vmem:[%s1880_s3 + $0x130] sm:$0xf] %vm265_vm1, %v1207_v34  ;;  %v189_v40 = vadd.f32 %v188_v37, %v1043_v33 }
  0xde   :  { %v1229_v42 = vpack.c.bf16 %v187_v36, %v187_v36  ;;  %v152_v43 = vpop.f32.mrf.mxu0  ;;  %v192_v44 = vpop.f32.mrf.mxu1 }
  0xdf   :  { %428 = vrot.lane.b32.xlu0 %v1049_v41, %s955_s24  ;;  %271 = vst.msk [vmem:[%s1880_s3 + $0x14] sm:$0xf] %vm265_vm1, %v1220_v38  ;;  %v1240_v45 = vpack.c.bf16 %v149_v39, %v149_v39  ;;  %v1242_v48 = vpack.c.bf16 %v189_v40, %v189_v40  ;;  %v153_v49 = vadd.f32 %v152_v43, %v1041_v32 }
  0xe0   :  { %430 = vrot.lane.b32.xlu1 %v1083_v53, %s955_s24  ;;  %279 = vst.msk [vmem:[%s1880_s3 + $0x34] sm:$0xf] %vm265_vm1, %v1229_v42  ;;  %v154_v50 = vpop.f32.mrf.mxu0  ;;  %v193_v41 = vadd.f32 %v192_v44, %v1041_v32  ;;  %v194_v51 = vpop.f32.mrf.mxu1 }
  0xe1   :  { %852 = vst.msk [vmem:[%s1880_s3 + $0x114] sm:$0xf] %vm265_vm1, %v1240_v45  ;;  %860 = vst.msk [vmem:[%s1880_s3 + $0x134] sm:$0xf] %vm265_vm1, %v1242_v48  ;;  %v1261_v53 = vpack.c.bf16 %v153_v49, %v153_v49  ;;  %v155_v54 = vadd.f32 %v154_v50, %v1043_v33  ;;  %v195_v55 = vadd.f32 %v194_v51, %v1043_v33 }
  0xe2   :  { %v156_v56 = vpop.f32.mrf.mxu0  ;;  %v1265_v57 = vpack.c.bf16 %v193_v41, %v193_v41  ;;  %v196_v60 = vpop.f32.mrf.mxu1 }
  0xe3   :  { %558 = vrot.lane.b32.xlu0 %v1063_v46, %s953_s1  ;;  %272 = vst.msk [vmem:[%s1880_s3 + $0x18] sm:$0xf] %vm265_vm1, %v1261_v53  ;;  %v1276_v61 = vpack.c.bf16 %v155_v54, %v155_v54  ;;  %v157_v62 = vadd.f32 %v156_v56, %v1041_v32  ;;  %v1279_v63 = vpack.c.bf16 %v195_v55, %v195_v55 }
  0xe4   :  { %560 = vrot.lane.b32.xlu1 %v1097_v58, %s953_s1  ;;  %280 = vst.msk [vmem:[%s1880_s3 + $0x38] sm:$0xf] %vm265_vm1, %v1265_v57  ;;  %v158_v1 = vpop.f32.mrf.mxu0  ;;  %v197_v2 = vadd.f32 %v196_v60, %v1041_v32  ;;  %v198_v3 = vpop.f32.mrf.mxu1 }
  0xe5   :  { %853 = vst.msk [vmem:[%s1880_s3 + $0x118] sm:$0xf] %vm265_vm1, %v1276_v61  ;;  %v1292_v5 = vpack.c.bf16 %v157_v62, %v157_v62  ;;  %v159_v7 = vadd.f32 %v158_v1, %v1043_v33  ;;  %861 = vst.msk [vmem:[%s1880_s3 + $0x138] sm:$0xf] %vm265_vm1, %v1279_v63  ;;  %v199_v9 = vadd.f32 %v198_v3, %v1043_v33 }
  0xe6   :  { %v1301_v32 = vpack.c.bf16 %v197_v2, %v197_v2 }
  0xe7   :  { %574 = vrot.lane.b32.xlu0 %v1065_v47, %s953_s1  ;;  %273 = vst.msk [vmem:[%s1880_s3 + $0x1c] sm:$0xf] %vm265_vm1, %v1292_v5  ;;  %v1312_v10 = vpack.c.bf16 %v159_v7, %v159_v7  ;;  %v1314_v11 = vpack.c.bf16 %v199_v9, %v199_v9 }
  0xe8   :  { %576 = vrot.lane.b32.xlu1 %v1099_v59, %s953_s1  ;;  %281 = vst.msk [vmem:[%s1880_s3 + $0x3c] sm:$0xf] %vm265_vm1, %v1301_v32 }
  0xe9   :  { %854 = vst.msk [vmem:[%s1880_s3 + $0x11c] sm:$0xf] %vm265_vm1, %v1312_v10  ;;  %862 = vst.msk [vmem:[%s1880_s3 + $0x13c] sm:$0xf] %vm265_vm1, %v1314_v11 }
  0xeb   :  { %623 = vrot.lane.b32.xlu0 %v1063_v46, %s954_s9 }
  0xec   :  { %625 = vrot.lane.b32.xlu1 %v1097_v58, %s954_s9 }
  0xef   :  { %639 = vrot.lane.b32.xlu0 %v1065_v47, %s954_s9 }
  0xf0   :  { %641 = vrot.lane.b32.xlu1 %v1099_v59, %s954_s9 }
  0xf3   :  { %688 = vrot.lane.b32.xlu0 %v1063_v46, %s955_s24 }
  0xf4   :  { %690 = vrot.lane.b32.xlu1 %v1097_v58, %s955_s24 }
  0xf7   :  { %704 = vrot.lane.b32.xlu0 %v1065_v47, %s955_s24 }
  0xf8   :  { %706 = vrot.lane.b32.xlu1 %v1099_v59, %s955_s24 }
  0xfb   :  { %284 = vrot.lane.b32.xlu0 %v1081_v52, %s953_s1 }
  0xfc   :  { %286 = vrot.lane.b32.xlu1 %v1117_v0, %s953_s1 }
  0xff   :  { %302 = vrot.lane.b32.xlu0 %v1121_v4, %s953_s1 }
 0x100   :  { %288 = vrot.lane.b32.xlu1 %v1148_v12, %s953_s1 }
 0x103   :  { %351 = vrot.lane.b32.xlu0 %v1117_v0, %s954_s9 }
 0x104   :  { %304 = vrot.lane.b32.xlu1 %v1157_v15, %s953_s1 }
 0x107   :  { %367 = vrot.lane.b32.xlu0 %v1121_v4, %s954_s9 }
 0x108   :  { %353 = vrot.lane.b32.xlu1 %v1148_v12, %s954_s9 }
 0x10b   :  { %416 = vrot.lane.b32.xlu0 %v1117_v0, %s955_s24 }
 0x10c   :  { %369 = vrot.lane.b32.xlu1 %v1157_v15, %s954_s9 }
 0x10f   :  { %432 = vrot.lane.b32.xlu0 %v1121_v4, %s955_s24 }
 0x110   :  { %418 = vrot.lane.b32.xlu1 %v1148_v12, %s955_s24 }
 0x113   :  { %562 = vrot.lane.b32.xlu0 %v1132_v6, %s953_s1 }
 0x114   :  { %434 = vrot.lane.b32.xlu1 %v1157_v15, %s955_s24 }
 0x117   :  { %578 = vrot.lane.b32.xlu0 %v1135_v8, %s953_s1 }
 0x118   :  { %564 = vrot.lane.b32.xlu1 %v1168_v18, %s953_s1 }
 0x11b   :  { %627 = vrot.lane.b32.xlu0 %v1132_v6, %s954_s9 }
 0x11c   :  { %580 = vrot.lane.b32.xlu1 %v1170_v19, %s953_s1 }
 0x11f   :  { %643 = vrot.lane.b32.xlu0 %v1135_v8, %s954_s9 }
 0x120   :  { %629 = vrot.lane.b32.xlu1 %v1168_v18, %s954_s9 }
 0x123   :  { %692 = vrot.lane.b32.xlu0 %v1132_v6, %s955_s24 }
 0x124   :  { %645 = vrot.lane.b32.xlu1 %v1170_v19, %s954_s9 }
 0x127   :  { %708 = vrot.lane.b32.xlu0 %v1135_v8, %s955_s24 }
 0x128   :  { %694 = vrot.lane.b32.xlu1 %v1168_v18, %s955_s24 }
 0x12b   :  { %290 = vrot.lane.b32.xlu0 %v1189_v24, %s953_s1 }
 0x12c   :  { %710 = vrot.lane.b32.xlu1 %v1170_v19, %s955_s24 }
 0x12f   :  { %306 = vrot.lane.b32.xlu0 %v1193_v28, %s953_s1 }
 0x130   :  { %292 = vrot.lane.b32.xlu1 %v1220_v38, %s953_s1 }
 0x133   :  { %355 = vrot.lane.b32.xlu0 %v1189_v24, %s954_s9 }
 0x134   :  { %308 = vrot.lane.b32.xlu1 %v1229_v42, %s953_s1 }
 0x137   :  { %371 = vrot.lane.b32.xlu0 %v1193_v28, %s954_s9 }
 0x138   :  { %357 = vrot.lane.b32.xlu1 %v1220_v38, %s954_s9 }
 0x13b   :  { %420 = vrot.lane.b32.xlu0 %v1189_v24, %s955_s24 }
 0x13c   :  { %373 = vrot.lane.b32.xlu1 %v1229_v42, %s954_s9 }
 0x13d   :  { %v283_v33 = vpop.permute.xlu0 %282 }
 0x13e   :  { %783 = vst.msk [vmem:[%s1880_s3 + $0x40] sm:$0xf] %vm265_vm1, %v283_v33 }
 0x13f   :  { %436 = vrot.lane.b32.xlu0 %v1193_v28, %s955_s24 }
 0x140   :  { %422 = vrot.lane.b32.xlu1 %v1220_v38, %s955_s24 }
 0x141   :  { %v299_v47 = vpop.permute.xlu0 %298 }
 0x142   :  { %v301_v46 = vpop.permute.xlu1 %300  ;;  %791 = vst.msk [vmem:[%s1880_s3 + $0x60] sm:$0xf] %vm265_vm1, %v299_v47 }
 0x143   :  { %792 = vst.msk [vmem:[%s1880_s3 + $0x64] sm:$0xf] %vm265_vm1, %v301_v46  ;;  %566 = vrot.lane.b32.xlu0 %v1204_v30, %s953_s1 }
 0x144   :  { %438 = vrot.lane.b32.xlu1 %v1229_v42, %s955_s24 }
 0x145   :  { %v348_v58 = vpop.permute.xlu0 %347 }
 0x146   :  { %v350_v52 = vpop.permute.xlu1 %349  ;;  %799 = vst.msk [vmem:[%s1880_s3 + $0x80] sm:$0xf] %vm265_vm1, %v348_v58 }
 0x147   :  { %800 = vst.msk [vmem:[%s1880_s3 + $0x84] sm:$0xf] %vm265_vm1, %v350_v52  ;;  %582 = vrot.lane.b32.xlu0 %v1207_v34, %s953_s1 }
 0x148   :  { %568 = vrot.lane.b32.xlu1 %v1240_v45, %s953_s1 }
 0x149   :  { %v364_v0 = vpop.permute.xlu0 %363 }
 0x14a   :  { %v366_v59 = vpop.permute.xlu1 %365  ;;  %807 = vst.msk [vmem:[%s1880_s3 + $0xa0] sm:$0xf] %vm265_vm1, %v364_v0 }
 0x14b   :  { %808 = vst.msk [vmem:[%s1880_s3 + $0xa4] sm:$0xf] %vm265_vm1, %v366_v59  ;;  %631 = vrot.lane.b32.xlu0 %v1204_v30, %s954_s9 }
 0x14c   :  { %584 = vrot.lane.b32.xlu1 %v1242_v48, %s953_s1 }
 0x14d   :  { %v413_v6 = vpop.permute.xlu0 %412 }
 0x14e   :  { %v415_v4 = vpop.permute.xlu1 %414  ;;  %815 = vst.msk [vmem:[%s1880_s3 + $0xc0] sm:$0xf] %vm265_vm1, %v413_v6 }
 0x14f   :  { %816 = vst.msk [vmem:[%s1880_s3 + $0xc4] sm:$0xf] %vm265_vm1, %v415_v4  ;;  %647 = vrot.lane.b32.xlu0 %v1207_v34, %s954_s9 }
 0x150   :  { %633 = vrot.lane.b32.xlu1 %v1240_v45, %s954_s9 }
 0x151   :  { %v429_v12 = vpop.permute.xlu0 %428 }
 0x152   :  { %v431_v8 = vpop.permute.xlu1 %430  ;;  %823 = vst.msk [vmem:[%s1880_s3 + $0xe0] sm:$0xf] %vm265_vm1, %v429_v12 }
 0x153   :  { %824 = vst.msk [vmem:[%s1880_s3 + $0xe4] sm:$0xf] %vm265_vm1, %v431_v8  ;;  %696 = vrot.lane.b32.xlu0 %v1204_v30, %s955_s24 }
 0x154   :  { %649 = vrot.lane.b32.xlu1 %v1242_v48, %s954_s9 }
 0x155   :  { %v559_v14 = vpop.permute.xlu0 %558 }
 0x156   :  { %v561_v13 = vpop.permute.xlu1 %560  ;;  %863 = vst.msk [vmem:[%s1880_s3 + $0x140] sm:$0xf] %vm265_vm1, %v559_v14 }
 0x157   :  { %864 = vst.msk [vmem:[%s1880_s3 + $0x144] sm:$0xf] %vm265_vm1, %v561_v13  ;;  %712 = vrot.lane.b32.xlu0 %v1207_v34, %s955_s24 }
 0x158   :  { %698 = vrot.lane.b32.xlu1 %v1240_v45, %s955_s24 }
 0x159   :  { %v575_v16 = vpop.permute.xlu0 %574 }
 0x15a   :  { %v577_v15 = vpop.permute.xlu1 %576  ;;  %871 = vst.msk [vmem:[%s1880_s3 + $0x160] sm:$0xf] %vm265_vm1, %v575_v16 }
 0x15b   :  { %872 = vst.msk [vmem:[%s1880_s3 + $0x164] sm:$0xf] %vm265_vm1, %v577_v15  ;;  %294 = vrot.lane.b32.xlu0 %v1261_v53, %s953_s1 }
 0x15c   :  { %714 = vrot.lane.b32.xlu1 %v1242_v48, %s955_s24 }
 0x15d   :  { %v624_v18 = vpop.permute.xlu0 %623 }
 0x15e   :  { %v626_v17 = vpop.permute.xlu1 %625  ;;  %879 = vst.msk [vmem:[%s1880_s3 + $0x180] sm:$0xf] %vm265_vm1, %v624_v18 }
 0x15f   :  { %880 = vst.msk [vmem:[%s1880_s3 + $0x184] sm:$0xf] %vm265_vm1, %v626_v17  ;;  %310 = vrot.lane.b32.xlu0 %v1265_v57, %s953_s1 }
 0x160   :  { %296 = vrot.lane.b32.xlu1 %v1292_v5, %s953_s1 }
 0x161   :  { %v640_v20 = vpop.permute.xlu0 %639 }
 0x162   :  { %v642_v19 = vpop.permute.xlu1 %641  ;;  %887 = vst.msk [vmem:[%s1880_s3 + $0x1a0] sm:$0xf] %vm265_vm1, %v640_v20 }
 0x163   :  { %888 = vst.msk [vmem:[%s1880_s3 + $0x1a4] sm:$0xf] %vm265_vm1, %v642_v19  ;;  %359 = vrot.lane.b32.xlu0 %v1261_v53, %s954_s9 }
 0x164   :  { %312 = vrot.lane.b32.xlu1 %v1301_v32, %s953_s1 }
 0x165   :  { %v689_v22 = vpop.permute.xlu0 %688 }
 0x166   :  { %v691_v21 = vpop.permute.xlu1 %690  ;;  %895 = vst.msk [vmem:[%s1880_s3 + $0x1c0] sm:$0xf] %vm265_vm1, %v689_v22 }
 0x167   :  { %896 = vst.msk [vmem:[%s1880_s3 + $0x1c4] sm:$0xf] %vm265_vm1, %v691_v21  ;;  %375 = vrot.lane.b32.xlu0 %v1265_v57, %s954_s9 }
 0x168   :  { %361 = vrot.lane.b32.xlu1 %v1292_v5, %s954_s9 }
 0x169   :  { %v705_v24 = vpop.permute.xlu0 %704 }
 0x16a   :  { %v707_v23 = vpop.permute.xlu1 %706  ;;  %903 = vst.msk [vmem:[%s1880_s3 + $0x1e0] sm:$0xf] %vm265_vm1, %v705_v24 }
 0x16b   :  { %904 = vst.msk [vmem:[%s1880_s3 + $0x1e4] sm:$0xf] %vm265_vm1, %v707_v23  ;;  %424 = vrot.lane.b32.xlu0 %v1261_v53, %s955_s24 }
 0x16c   :  { %377 = vrot.lane.b32.xlu1 %v1301_v32, %s954_s9 }
 0x16d   :  { %v285_v26 = vpop.permute.xlu0 %284 }
 0x16e   :  { %v287_v25 = vpop.permute.xlu1 %286  ;;  %784 = vst.msk [vmem:[%s1880_s3 + $0x44] sm:$0xf] %vm265_vm1, %v285_v26 }
 0x16f   :  { %785 = vst.msk [vmem:[%s1880_s3 + $0x48] sm:$0xf] %vm265_vm1, %v287_v25  ;;  %440 = vrot.lane.b32.xlu0 %v1265_v57, %s955_s24 }
 0x170   :  { %426 = vrot.lane.b32.xlu1 %v1292_v5, %s955_s24 }
 0x171   :  { %v303_v28 = vpop.permute.xlu0 %302 }
 0x172   :  { %v289_v27 = vpop.permute.xlu1 %288  ;;  %793 = vst.msk [vmem:[%s1880_s3 + $0x68] sm:$0xf] %vm265_vm1, %v303_v28 }
 0x173   :  { %786 = vst.msk [vmem:[%s1880_s3 + $0x4c] sm:$0xf] %vm265_vm1, %v289_v27  ;;  %570 = vrot.lane.b32.xlu0 %v1276_v61, %s953_s1 }
 0x174   :  { %442 = vrot.lane.b32.xlu1 %v1301_v32, %s955_s24 }
 0x175   :  { %v352_v30 = vpop.permute.xlu0 %351 }
 0x176   :  { %v305_v29 = vpop.permute.xlu1 %304  ;;  %801 = vst.msk [vmem:[%s1880_s3 + $0x88] sm:$0xf] %vm265_vm1, %v352_v30 }
 0x177   :  { %794 = vst.msk [vmem:[%s1880_s3 + $0x6c] sm:$0xf] %vm265_vm1, %v305_v29  ;;  %586 = vrot.lane.b32.xlu0 %v1279_v63, %s953_s1 }
 0x178   :  { %572 = vrot.lane.b32.xlu1 %v1312_v10, %s953_s1 }
 0x179   :  { %v368_v34 = vpop.permute.xlu0 %367 }
 0x17a   :  { %v354_v31 = vpop.permute.xlu1 %353  ;;  %809 = vst.msk [vmem:[%s1880_s3 + $0xa8] sm:$0xf] %vm265_vm1, %v368_v34 }
 0x17b   :  { %802 = vst.msk [vmem:[%s1880_s3 + $0x8c] sm:$0xf] %vm265_vm1, %v354_v31  ;;  %635 = vrot.lane.b32.xlu0 %v1276_v61, %s954_s9 }
 0x17c   :  { %588 = vrot.lane.b32.xlu1 %v1314_v11, %s953_s1 }
 0x17d   :  { %v417_v36 = vpop.permute.xlu0 %416 }
 0x17e   :  { %v370_v35 = vpop.permute.xlu1 %369  ;;  %817 = vst.msk [vmem:[%s1880_s3 + $0xc8] sm:$0xf] %vm265_vm1, %v417_v36 }
 0x17f   :  { %810 = vst.msk [vmem:[%s1880_s3 + $0xac] sm:$0xf] %vm265_vm1, %v370_v35  ;;  %651 = vrot.lane.b32.xlu0 %v1279_v63, %s954_s9 }
 0x180   :  { %637 = vrot.lane.b32.xlu1 %v1312_v10, %s954_s9 }
 0x181   :  { %v433_v38 = vpop.permute.xlu0 %432 }
 0x182   :  { %v419_v37 = vpop.permute.xlu1 %418  ;;  %825 = vst.msk [vmem:[%s1880_s3 + $0xe8] sm:$0xf] %vm265_vm1, %v433_v38 }
 0x183   :  { %818 = vst.msk [vmem:[%s1880_s3 + $0xcc] sm:$0xf] %vm265_vm1, %v419_v37  ;;  %700 = vrot.lane.b32.xlu0 %v1276_v61, %s955_s24 }
 0x184   :  { %653 = vrot.lane.b32.xlu1 %v1314_v11, %s954_s9 }
 0x185   :  { %v563_v40 = vpop.permute.xlu0 %562 }
 0x186   :  { %v435_v39 = vpop.permute.xlu1 %434  ;;  %865 = vst.msk [vmem:[%s1880_s3 + $0x148] sm:$0xf] %vm265_vm1, %v563_v40 }
 0x187   :  { %826 = vst.msk [vmem:[%s1880_s3 + $0xec] sm:$0xf] %vm265_vm1, %v435_v39  ;;  %716 = vrot.lane.b32.xlu0 %v1279_v63, %s955_s24 }
 0x188   :  { %702 = vrot.lane.b32.xlu1 %v1312_v10, %s955_s24 }
 0x189   :  { %v579_v43 = vpop.permute.xlu0 %578 }
 0x18a   :  { %v565_v42 = vpop.permute.xlu1 %564  ;;  %873 = vst.msk [vmem:[%s1880_s3 + $0x168] sm:$0xf] %vm265_vm1, %v579_v43 }
 0x18b   :  { %866 = vst.msk [vmem:[%s1880_s3 + $0x14c] sm:$0xf] %vm265_vm1, %v565_v42 }
 0x18c   :  { %718 = vrot.lane.b32.xlu1 %v1314_v11, %s955_s24 }
 0x18d   :  { %v628_v45 = vpop.permute.xlu0 %627 }
 0x18e   :  { %v581_v44 = vpop.permute.xlu1 %580  ;;  %881 = vst.msk [vmem:[%s1880_s3 + $0x188] sm:$0xf] %vm265_vm1, %v628_v45 }
 0x18f   :  { %874 = vst.msk [vmem:[%s1880_s3 + $0x16c] sm:$0xf] %vm265_vm1, %v581_v44 }
 0x191   :  { %v644_v49 = vpop.permute.xlu0 %643 }
 0x192   :  { %v630_v48 = vpop.permute.xlu1 %629  ;;  %889 = vst.msk [vmem:[%s1880_s3 + $0x1a8] sm:$0xf] %vm265_vm1, %v644_v49 }
 0x193   :  { %882 = vst.msk [vmem:[%s1880_s3 + $0x18c] sm:$0xf] %vm265_vm1, %v630_v48 }
 0x195   :  { %v693_v41 = vpop.permute.xlu0 %692 }
 0x196   :  { %v646_v50 = vpop.permute.xlu1 %645  ;;  %897 = vst.msk [vmem:[%s1880_s3 + $0x1c8] sm:$0xf] %vm265_vm1, %v693_v41 }
 0x197   :  { %890 = vst.msk [vmem:[%s1880_s3 + $0x1ac] sm:$0xf] %vm265_vm1, %v646_v50 }
 0x199   :  { %v709_v53 = vpop.permute.xlu0 %708 }
 0x19a   :  { %v695_v51 = vpop.permute.xlu1 %694  ;;  %905 = vst.msk [vmem:[%s1880_s3 + $0x1e8] sm:$0xf] %vm265_vm1, %v709_v53 }
 0x19b   :  { %898 = vst.msk [vmem:[%s1880_s3 + $0x1cc] sm:$0xf] %vm265_vm1, %v695_v51 }
 0x19d   :  { %v291_v55 = vpop.permute.xlu0 %290 }
 0x19e   :  { %v711_v54 = vpop.permute.xlu1 %710  ;;  %787 = vst.msk [vmem:[%s1880_s3 + $0x50] sm:$0xf] %vm265_vm1, %v291_v55 }
 0x19f   :  { %906 = vst.msk [vmem:[%s1880_s3 + $0x1ec] sm:$0xf] %vm265_vm1, %v711_v54 }
 0x1a1   :  { %v307_v57 = vpop.permute.xlu0 %306 }
 0x1a2   :  { %v293_v56 = vpop.permute.xlu1 %292  ;;  %795 = vst.msk [vmem:[%s1880_s3 + $0x70] sm:$0xf] %vm265_vm1, %v307_v57 }
 0x1a3   :  { %788 = vst.msk [vmem:[%s1880_s3 + $0x54] sm:$0xf] %vm265_vm1, %v293_v56 }
 0x1a5   :  { %v356_v61 = vpop.permute.xlu0 %355 }
 0x1a6   :  { %v309_v60 = vpop.permute.xlu1 %308  ;;  %803 = vst.msk [vmem:[%s1880_s3 + $0x90] sm:$0xf] %vm265_vm1, %v356_v61 }
 0x1a7   :  { %796 = vst.msk [vmem:[%s1880_s3 + $0x74] sm:$0xf] %vm265_vm1, %v309_v60 }
 0x1a9   :  { %v372_v63 = vpop.permute.xlu0 %371 }
 0x1aa   :  { %v358_v62 = vpop.permute.xlu1 %357  ;;  %811 = vst.msk [vmem:[%s1880_s3 + $0xb0] sm:$0xf] %vm265_vm1, %v372_v63 }
 0x1ab   :  { %804 = vst.msk [vmem:[%s1880_s3 + $0x94] sm:$0xf] %vm265_vm1, %v358_v62 }
 0x1ad   :  { %v421_v2 = vpop.permute.xlu0 %420 }
 0x1ae   :  { %v374_v1 = vpop.permute.xlu1 %373  ;;  %819 = vst.msk [vmem:[%s1880_s3 + $0xd0] sm:$0xf] %vm265_vm1, %v421_v2 }
 0x1af   :  { %812 = vst.msk [vmem:[%s1880_s3 + $0xb4] sm:$0xf] %vm265_vm1, %v374_v1 }
 0x1b1   :  { %v437_v5 = vpop.permute.xlu0 %436 }
 0x1b2   :  { %v423_v3 = vpop.permute.xlu1 %422  ;;  %827 = vst.msk [vmem:[%s1880_s3 + $0xf0] sm:$0xf] %vm265_vm1, %v437_v5 }
 0x1b3   :  { %820 = vst.msk [vmem:[%s1880_s3 + $0xd4] sm:$0xf] %vm265_vm1, %v423_v3 }
 0x1b5   :  { %v567_v9 = vpop.permute.xlu0 %566 }
 0x1b6   :  { %v439_v7 = vpop.permute.xlu1 %438  ;;  %867 = vst.msk [vmem:[%s1880_s3 + $0x150] sm:$0xf] %vm265_vm1, %v567_v9 }
 0x1b7   :  { %828 = vst.msk [vmem:[%s1880_s3 + $0xf4] sm:$0xf] %vm265_vm1, %v439_v7 }
 0x1b9   :  { %v583_v10 = vpop.permute.xlu0 %582 }
 0x1ba   :  { %v569_v32 = vpop.permute.xlu1 %568  ;;  %875 = vst.msk [vmem:[%s1880_s3 + $0x170] sm:$0xf] %vm265_vm1, %v583_v10 }
 0x1bb   :  { %868 = vst.msk [vmem:[%s1880_s3 + $0x154] sm:$0xf] %vm265_vm1, %v569_v32 }
 0x1bd   :  { %v632_v33 = vpop.permute.xlu0 %631 }
 0x1be   :  { %v585_v11 = vpop.permute.xlu1 %584  ;;  %883 = vst.msk [vmem:[%s1880_s3 + $0x190] sm:$0xf] %vm265_vm1, %v632_v33 }
 0x1bf   :  { %876 = vst.msk [vmem:[%s1880_s3 + $0x174] sm:$0xf] %vm265_vm1, %v585_v11 }
 0x1c1   :  { %v648_v47 = vpop.permute.xlu0 %647 }
 0x1c2   :  { %v634_v46 = vpop.permute.xlu1 %633  ;;  %891 = vst.msk [vmem:[%s1880_s3 + $0x1b0] sm:$0xf] %vm265_vm1, %v648_v47 }
 0x1c3   :  { %884 = vst.msk [vmem:[%s1880_s3 + $0x194] sm:$0xf] %vm265_vm1, %v634_v46 }
 0x1c5   :  { %v697_v58 = vpop.permute.xlu0 %696 }
 0x1c6   :  { %v650_v52 = vpop.permute.xlu1 %649  ;;  %899 = vst.msk [vmem:[%s1880_s3 + $0x1d0] sm:$0xf] %vm265_vm1, %v697_v58 }
 0x1c7   :  { %892 = vst.msk [vmem:[%s1880_s3 + $0x1b4] sm:$0xf] %vm265_vm1, %v650_v52 }
 0x1c9   :  { %v713_v0 = vpop.permute.xlu0 %712 }
 0x1ca   :  { %v699_v59 = vpop.permute.xlu1 %698  ;;  %907 = vst.msk [vmem:[%s1880_s3 + $0x1f0] sm:$0xf] %vm265_vm1, %v713_v0 }
 0x1cb   :  { %900 = vst.msk [vmem:[%s1880_s3 + $0x1d4] sm:$0xf] %vm265_vm1, %v699_v59 }
 0x1cd   :  { %v295_v6 = vpop.permute.xlu0 %294 }
 0x1ce   :  { %v715_v4 = vpop.permute.xlu1 %714  ;;  %789 = vst.msk [vmem:[%s1880_s3 + $0x58] sm:$0xf] %vm265_vm1, %v295_v6 }
 0x1cf   :  { %908 = vst.msk [vmem:[%s1880_s3 + $0x1f4] sm:$0xf] %vm265_vm1, %v715_v4 }
 0x1d1   :  { %v311_v12 = vpop.permute.xlu0 %310 }
 0x1d2   :  { %v297_v8 = vpop.permute.xlu1 %296  ;;  %797 = vst.msk [vmem:[%s1880_s3 + $0x78] sm:$0xf] %vm265_vm1, %v311_v12 }
 0x1d3   :  { %790 = vst.msk [vmem:[%s1880_s3 + $0x5c] sm:$0xf] %vm265_vm1, %v297_v8 }
 0x1d5   :  { %v360_v14 = vpop.permute.xlu0 %359 }
 0x1d6   :  { %v313_v13 = vpop.permute.xlu1 %312  ;;  %805 = vst.msk [vmem:[%s1880_s3 + $0x98] sm:$0xf] %vm265_vm1, %v360_v14 }
 0x1d7   :  { %798 = vst.msk [vmem:[%s1880_s3 + $0x7c] sm:$0xf] %vm265_vm1, %v313_v13 }
 0x1d9   :  { %v376_v16 = vpop.permute.xlu0 %375 }
 0x1da   :  { %v362_v15 = vpop.permute.xlu1 %361  ;;  %813 = vst.msk [vmem:[%s1880_s3 + $0xb8] sm:$0xf] %vm265_vm1, %v376_v16 }
 0x1db   :  { %806 = vst.msk [vmem:[%s1880_s3 + $0x9c] sm:$0xf] %vm265_vm1, %v362_v15 }
 0x1dd   :  { %v425_v18 = vpop.permute.xlu0 %424 }
 0x1de   :  { %v378_v17 = vpop.permute.xlu1 %377  ;;  %821 = vst.msk [vmem:[%s1880_s3 + $0xd8] sm:$0xf] %vm265_vm1, %v425_v18 }
 0x1df   :  { %814 = vst.msk [vmem:[%s1880_s3 + $0xbc] sm:$0xf] %vm265_vm1, %v378_v17 }
 0x1e1   :  { %v441_v20 = vpop.permute.xlu0 %440 }
 0x1e2   :  { %v427_v19 = vpop.permute.xlu1 %426  ;;  %829 = vst.msk [vmem:[%s1880_s3 + $0xf8] sm:$0xf] %vm265_vm1, %v441_v20 }
 0x1e3   :  { %822 = vst.msk [vmem:[%s1880_s3 + $0xdc] sm:$0xf] %vm265_vm1, %v427_v19 }
 0x1e5   :  { %v571_v22 = vpop.permute.xlu0 %570 }
 0x1e6   :  { %v443_v21 = vpop.permute.xlu1 %442  ;;  %869 = vst.msk [vmem:[%s1880_s3 + $0x158] sm:$0xf] %vm265_vm1, %v571_v22 }
 0x1e7   :  { %830 = vst.msk [vmem:[%s1880_s3 + $0xfc] sm:$0xf] %vm265_vm1, %v443_v21 }
 0x1e9   :  { %v587_v24 = vpop.permute.xlu0 %586 }
 0x1ea   :  { %v573_v23 = vpop.permute.xlu1 %572  ;;  %877 = vst.msk [vmem:[%s1880_s3 + $0x178] sm:$0xf] %vm265_vm1, %v587_v24 }
 0x1eb   :  { %870 = vst.msk [vmem:[%s1880_s3 + $0x15c] sm:$0xf] %vm265_vm1, %v573_v23 }
 0x1ed   :  { %v636_v26 = vpop.permute.xlu0 %635 }
 0x1ee   :  { %v589_v25 = vpop.permute.xlu1 %588  ;;  %885 = vst.msk [vmem:[%s1880_s3 + $0x198] sm:$0xf] %vm265_vm1, %v636_v26 }
 0x1ef   :  { %878 = vst.msk [vmem:[%s1880_s3 + $0x17c] sm:$0xf] %vm265_vm1, %v589_v25 }
 0x1f1   :  { %v652_v28 = vpop.permute.xlu0 %651 }
 0x1f2   :  { %v638_v27 = vpop.permute.xlu1 %637  ;;  %893 = vst.msk [vmem:[%s1880_s3 + $0x1b8] sm:$0xf] %vm265_vm1, %v652_v28 }
 0x1f3   :  { %886 = vst.msk [vmem:[%s1880_s3 + $0x19c] sm:$0xf] %vm265_vm1, %v638_v27 }
 0x1f5   :  { %v701_v30 = vpop.permute.xlu0 %700 }
 0x1f6   :  { %v654_v29 = vpop.permute.xlu1 %653  ;;  %901 = vst.msk [vmem:[%s1880_s3 + $0x1d8] sm:$0xf] %vm265_vm1, %v701_v30 }
 0x1f7   :  { %894 = vst.msk [vmem:[%s1880_s3 + $0x1bc] sm:$0xf] %vm265_vm1, %v654_v29 }
 0x1f9   :  { %v717_v34 = vpop.permute.xlu0 %716 }
 0x1fa   :  { %v703_v31 = vpop.permute.xlu1 %702  ;;  %909 = vst.msk [vmem:[%s1880_s3 + $0x1f8] sm:$0xf] %vm265_vm1, %v717_v34 }
 0x1fb   :  { %902 = vst.msk [vmem:[%s1880_s3 + $0x1dc] sm:$0xf] %vm265_vm1, %v703_v31 }
 0x1fe   :  { %v719_v35 = vpop.permute.xlu1 %718 }
 0x1ff   :  { %910 = vst.msk [vmem:[%s1880_s3 + $0x1fc] sm:$0xf] %vm265_vm1, %v719_v35 }

</bundles_post_ra>
